<compile_context>
chip_gen: v7x
topology: tpu7x:2x2x1
jax: 0.10.0
libtpu: 0.0.40
codegen_flags: <defaults>
</compile_context>

<pallas_src>
import functools
import math

import jax
import jax.numpy as jnp
from jax.experimental import pallas as pl
from jax.experimental.pallas import tpu as pltpu


def _tcn_fused_kernel(x_ref, w1_ref, b1_ref, w2_ref, b2_ref, w3_ref, b3_ref,
                      out_ref, xpad_ref, hpad_ref, *,
                      kernel_size, dilations, use_conv3, seq_len, cin, cout, cmax):
    """Full TCN forward for one batch element (grid axis = batch).

    xpad_ref / hpad_ref: (Lp_max + T, cmax) f32 VMEM scratch used for the causal
    left-padding of the conv1 input / conv2 input.  Channels are zero-padded up
    to `cmax` lanes; the zero-channel invariant is preserved through every block
    because padded weight rows/cols and padded bias entries are zero.
    """
    K = kernel_size
    T = seq_len
    L = len(dilations)

    # Zero the whole padded-activation scratch once per grid step: provides the
    # causal left-pad rows for layer 0 and the zero channel padding (lanes
    # cin..cmax-1).
    xpad_ref[...] = jnp.zeros_like(xpad_ref)
    lp0 = dilations[0] * (K - 1)
    xpad_ref[lp0:lp0 + T, 0:cin] = x_ref[0].astype(jnp.float32)

    for i in range(L):                      # static unroll over residual blocks
        d = dilations[i]
        lp = d * (K - 1)
        last = (i == L - 1)

        if i > 0 and lp > 0:
            # Re-zero the (larger) causal-pad region for this layer's dilation;
            # the activation itself was placed at rows [lp : lp+T] at the end of
            # the previous iteration.
            xpad_ref[0:lp, :] = jnp.zeros((lp, cmax), jnp.float32)

        # Hoisted weight / bias loads (once per layer).
        w1 = w1_ref[i]                      # (K, cmax, cmax)
        b1 = b1_ref[i]                      # (1, cmax)
        w2 = w2_ref[i]                      # (K, cmax, cmax)
        b2 = b2_ref[i]                      # (1, cmax)

        # ---- conv1: dilated causal conv = K time-shifted matmuls, f32 acc ----
        h = jnp.zeros((T, cmax), jnp.float32)
        for k in range(K):
            h = h + jnp.dot(xpad_ref[k * d:k * d + T, :], w1[k],
                            preferred_element_type=jnp.float32)
        h = jnp.maximum(h + b1, 0.0)
        # TODO(synk): MonteCarloDropout is stochastic at inference in the Torch
        # model; modelled as identity in this deterministic kernel.

        # ---- conv2: causal-pad h in VMEM, then K shifted matmuls ----
        if lp > 0:
            hpad_ref[0:lp, :] = jnp.zeros((lp, cmax), jnp.float32)
        hpad_ref[lp:lp + T, :] = h
        y = jnp.zeros((T, cmax), jnp.float32)
        for k in range(K):
            y = y + jnp.dot(hpad_ref[k * d:k * d + T, :], w2[k],
                            preferred_element_type=jnp.float32)
        y = y + b2
        if not last:
            y = jnp.maximum(y, 0.0)

        # ---- residual path ----
        res = xpad_ref[lp:lp + T, :]
        if use_conv3[i]:
            res = jnp.dot(res, w3_ref[i],
                          preferred_element_type=jnp.float32) + b3_ref[i]
        act = y + res                       # (T, cmax); padded lanes remain zero

        if last:
            out_ref[0] = act[:, 0:cout].astype(out_ref.dtype)
        else:
            # Stage next block's input directly in VMEM at its padding offset.
            lp_next = dilations[i + 1] * (K - 1)
            xpad_ref[lp_next:lp_next + T, :] = act


def _tcn_forward_pallas(x, w1, b1, w2, b2, w3, b3, *, kernel_size, dilations,
                        use_conv3, cout):
    B, T, cin = x.shape
    cmax = w1.shape[-1]
    lp_max = max(dilations) * (kernel_size - 1)

    def _resident(arr):
        nd = arr.ndim
        return pl.BlockSpec(arr.shape, lambda b: (0,) * nd)   # constant block -> stays in VMEM

    kern = functools.partial(
        _tcn_fused_kernel,
        kernel_size=kernel_size, dilations=tuple(dilations),
        use_conv3=tuple(use_conv3), seq_len=T, cin=cin, cout=cout, cmax=cmax)

    return pl.pallas_call(
        kern,
        out_shape=jax.ShapeDtypeStruct((B, T, cout), x.dtype),
        grid=(B,),
        in_specs=[pl.BlockSpec((1, T, cin), lambda b: (b, 0, 0)),
                  _resident(w1), _resident(b1), _resident(w2),
                  _resident(b2), _resident(w3), _resident(b3)],
        out_specs=pl.BlockSpec((1, T, cout), lambda b: (b, 0, 0)),
        scratch_shapes=[pltpu.VMEM((lp_max + T, cmax), jnp.float32),
                        pltpu.VMEM((lp_max + T, cmax), jnp.float32)],
        compiler_params=pltpu.CompilerParams(
            dimension_semantics=("parallel",)),
    )(x, w1, b1, w2, b2, w3, b3)


def _conv1d_params(key, cin_, cout_, k):
    """PyTorch nn.Conv1d default init: U(-1/sqrt(cin*k), +1/sqrt(cin*k))."""
    bound = 1.0 / math.sqrt(cin_ * k)
    kw, kb = jax.random.split(key)
    w = jax.random.uniform(kw, (cout_, cin_, k), jnp.float32, -bound, bound)
    b = jax.random.uniform(kb, (cout_,), jnp.float32, -bound, bound)
    # kernel layout: weights (k, cin, cout), bias (1, cout)
    return jnp.transpose(w, (2, 1, 0)), b.reshape(1, cout_)


def _pad_to(arr, shape):
    return jnp.pad(arr, [(0, s - a) for a, s in zip(arr.shape, shape)])


class TCNFilteringModelPallas:
    def __init__(self, input_chunk_length, input_channel_size, output_chunk_length,
                 kernel_size, num_filters, num_layers, dilation_base, weight_norm,
                 target_size, nr_params, dropout, *, key):
        # weight_norm at a fresh deterministic init is an identity reparameterization.
        # TODO(synk): MonteCarloDropout (active at inference) has no deterministic
        # Pallas equivalent; treated as identity (exact for dropout=0).
        del weight_norm, dropout
        self.input_chunk_length = input_chunk_length
        self.output_chunk_length = output_chunk_length
        self.target_size = target_size
        self.nr_params = nr_params
        self.kernel_size = kernel_size

        if num_layers is None and dilation_base > 1:
            num_layers = math.ceil(math.log(
                (input_chunk_length - 1) * (dilation_base - 1)
                / (kernel_size - 1) / 2 + 1, dilation_base))
        elif num_layers is None:
            num_layers = math.ceil((input_chunk_length - 1) / (kernel_size - 1) / 2)
        self.num_layers = num_layers

        cout = target_size * nr_params
        cmax = max(input_channel_size, num_filters, cout)
        self.cout = cout
        self.cmax = cmax

        W1, B1, W2, B2, W3, B3 = [], [], [], [], [], []
        dilations, use_conv3 = [], []
        for i in range(num_layers):
            input_dim = input_channel_size if i == 0 else num_filters
            output_dim = cout if i == num_layers - 1 else num_filters
            key, k1, k2, k3 = jax.random.split(key, 4)
            w1, b1 = _conv1d_params(k1, input_dim, num_filters, kernel_size)
            w2, b2 = _conv1d_params(k2, num_filters, output_dim, kernel_size)
            W1.append(_pad_to(w1, (kernel_size, cmax, cmax)))
            B1.append(_pad_to(b1, (1, cmax)))
            W2.append(_pad_to(w2, (kernel_size, cmax, cmax)))
            B2.append(_pad_to(b2, (1, cmax)))
            if input_dim != output_dim:
                w3, b3 = _conv1d_params(k3, input_dim, output_dim, 1)
                W3.append(_pad_to(w3[0], (cmax, cmax)))
                B3.append(_pad_to(b3, (1, cmax)))
                use_conv3.append(True)
            else:
                W3.append(jnp.zeros((cmax, cmax), jnp.float32))
                B3.append(jnp.zeros((1, cmax), jnp.float32))
                use_conv3.append(False)
            dilations.append(dilation_base ** i)

        # Stack per-layer (zero-padded) weights so the fused kernel takes a fixed,
        # small operand set, loaded to VMEM once and resident across the batch grid.
        self.W1 = jnp.stack(W1)   # (L, K, cmax, cmax)
        self.B1 = jnp.stack(B1)   # (L, 1, cmax)
        self.W2 = jnp.stack(W2)
        self.B2 = jnp.stack(B2)
        self.W3 = jnp.stack(W3)   # (L, cmax, cmax)
        self.B3 = jnp.stack(B3)
        self.dilations = tuple(dilations)
        self.use_conv3 = tuple(use_conv3)

    def __call__(self, x):
        # x: (B, input_chunk_length, input_channel_size)
        B = x.shape[0]
        h = _tcn_forward_pallas(
            x, self.W1, self.B1, self.W2, self.B2, self.W3, self.B3,
            kernel_size=self.kernel_size, dilations=self.dilations,
            use_conv3=self.use_conv3, cout=self.cout)
        # h: (B, T, target_size * nr_params) -> (B, T, target, nr_params)
        y = h.reshape(B, self.input_chunk_length, self.target_size, self.nr_params)
        return y[:, -self.output_chunk_length:, :, :]


if __name__ == "__main__":
    key = jax.random.PRNGKey(0)
    kparams, kx = jax.random.split(key)

    model = TCNFilteringModelPallas(
        input_chunk_length=16,
        input_channel_size=4,
        output_chunk_length=8,
        kernel_size=3,
        num_filters=8,
        num_layers=None,          # derived: 3 layers (dilations 1, 2, 4)
        dilation_base=2,
        weight_norm=False,
        target_size=2,
        nr_params=1,
        dropout=0.0,
        key=kparams,
    )

    x = jax.random.normal(kx, (2, 16, 4), dtype=jnp.float32)
    out = model(x)
    jax.block_until_ready(out)
    assert out.shape == (2, 8, 2, 1), out.shape
    print("KERNEL_OK")
</pallas_src>

<mosaic_0001>
module attributes {stable_mosaic.version = 11 : i64} {
  func.func @_tcn_fused_kernel(%arg0: i32, %arg1: memref<1x16x4xf32, #tpu.memory_space<vmem>>, %arg2: memref<3x3x8x8xf32, #tpu.memory_space<vmem>>, %arg3: memref<3x1x8xf32, #tpu.memory_space<vmem>>, %arg4: memref<3x3x8x8xf32, #tpu.memory_space<vmem>>, %arg5: memref<3x1x8xf32, #tpu.memory_space<vmem>>, %arg6: memref<3x8x8xf32, #tpu.memory_space<vmem>>, %arg7: memref<3x1x8xf32, #tpu.memory_space<vmem>>, %arg8: memref<1x16x2xf32, #tpu.memory_space<vmem>>, %arg9: memref<24x8xf32, #tpu.memory_space<vmem>>, %arg10: memref<24x8xf32, #tpu.memory_space<vmem>>) attributes {dimension_semantics = [#tpu.dimension_semantics<parallel>], iteration_bounds = array<i64: 2>, scalar_prefetch = 0 : i64, scratch_operands = 2 : i64, tpu.core_type = #tpu.core_type<tc>, window_params = [{transform_indices = @transform_0, window_bounds = array<i64: 1, 16, 4>}, {pipeline_mode = #tpu.pipeline_mode<synchronous>, transform_indices = @transform_1, window_bounds = array<i64: 3, 3, 8, 8>}, {pipeline_mode = #tpu.pipeline_mode<synchronous>, transform_indices = @transform_2, window_bounds = array<i64: 3, 1, 8>}, {pipeline_mode = #tpu.pipeline_mode<synchronous>, transform_indices = @transform_3, window_bounds = array<i64: 3, 3, 8, 8>}, {pipeline_mode = #tpu.pipeline_mode<synchronous>, transform_indices = @transform_4, window_bounds = array<i64: 3, 1, 8>}, {pipeline_mode = #tpu.pipeline_mode<synchronous>, transform_indices = @transform_5, window_bounds = array<i64: 3, 8, 8>}, {pipeline_mode = #tpu.pipeline_mode<synchronous>, transform_indices = @transform_6, window_bounds = array<i64: 3, 1, 8>}, {transform_indices = @transform_7, window_bounds = array<i64: 1, 16, 2>}]} {
    %cst = arith.constant 0.000000e+00 : f32
    %0 = vector.broadcast %cst : f32 to vector<24x8xf32>
    %c0 = arith.constant 0 : index
    %c0_0 = arith.constant 0 : index
    %1 = vector.load %arg9[%c0, %c0_0] : memref<24x8xf32, #tpu.memory_space<vmem>>, vector<24x8xf32>
    tpu.vector_store %arg9[%c0, %c0_0], %0 {strides = array<i32>} : memref<24x8xf32, #tpu.memory_space<vmem>>, vector<24x8xf32>,
    %c0_1 = arith.constant 0 : index
    %c0_2 = arith.constant 0 : index
    %c0_3 = arith.constant 0 : index
    %2 = vector.load %arg1[%c0_1, %c0_2, %c0_3] : memref<1x16x4xf32, #tpu.memory_space<vmem>>, vector<1x16x4xf32>
    %3 = vector.shape_cast %2 : vector<1x16x4xf32> to vector<16x4xf32>
    %c2 = arith.constant 2 : index
    %c0_4 = arith.constant 0 : index
    %4 = vector.load %arg9[%c2, %c0_4] : memref<24x8xf32, #tpu.memory_space<vmem>>, vector<16x4xf32>
    tpu.vector_store %arg9[%c2, %c0_4], %3 {strides = array<i32>} : memref<24x8xf32, #tpu.memory_space<vmem>>, vector<16x4xf32>,
    %c0_5 = arith.constant 0 : index
    %c0_6 = arith.constant 0 : index
    %c0_7 = arith.constant 0 : index
    %c0_8 = arith.constant 0 : index
    %5 = vector.load %arg2[%c0_5, %c0_6, %c0_7, %c0_8] : memref<3x3x8x8xf32, #tpu.memory_space<vmem>>, vector<1x3x8x8xf32>
    %6 = vector.shape_cast %5 : vector<1x3x8x8xf32> to vector<3x8x8xf32>
    %c0_9 = arith.constant 0 : index
    %c0_10 = arith.constant 0 : index
    %c0_11 = arith.constant 0 : index
    %7 = vector.load %arg3[%c0_9, %c0_10, %c0_11] : memref<3x1x8xf32, #tpu.memory_space<vmem>>, vector<1x1x8xf32>
    %8 = vector.shape_cast %7 : vector<1x1x8xf32> to vector<1x8xf32>
    %c0_12 = arith.constant 0 : index
    %c0_13 = arith.constant 0 : index
    %c0_14 = arith.constant 0 : index
    %c0_15 = arith.constant 0 : index
    %9 = vector.load %arg4[%c0_12, %c0_13, %c0_14, %c0_15] : memref<3x3x8x8xf32, #tpu.memory_space<vmem>>, vector<1x3x8x8xf32>
    %10 = vector.shape_cast %9 : vector<1x3x8x8xf32> to vector<3x8x8xf32>
    %c0_16 = arith.constant 0 : index
    %c0_17 = arith.constant 0 : index
    %c0_18 = arith.constant 0 : index
    %11 = vector.load %arg5[%c0_16, %c0_17, %c0_18] : memref<3x1x8xf32, #tpu.memory_space<vmem>>, vector<1x1x8xf32>
    %12 = vector.shape_cast %11 : vector<1x1x8xf32> to vector<1x8xf32>
    %cst_19 = arith.constant 0.000000e+00 : f32
    %13 = vector.broadcast %cst_19 : f32 to vector<16x8xf32>
    %c0_20 = arith.constant 0 : index
    %c0_21 = arith.constant 0 : index
    %14 = vector.load %arg9[%c0_20, %c0_21] : memref<24x8xf32, #tpu.memory_space<vmem>>, vector<16x8xf32>
    %15 = vector.extract_strided_slice %6 {offsets = [0, 0, 0], sizes = [1, 8, 8], strides = [1, 1, 1]} : vector<3x8x8xf32> to vector<1x8x8xf32>
    %16 = vector.shape_cast %15 : vector<1x8x8xf32> to vector<8x8xf32>
    %cst_22 = arith.constant dense<0.000000e+00> : vector<16x8xf32>
    %17 = tpu.matmul %14, %16, %cst_22 {dimension_numbers = #tpu.dot_dimension_numbers<[1], [0], [0], [1], [0, 0, 1, 1], [], []>} : vector<16x8xf32>, vector<8x8xf32>, vector<16x8xf32> -> vector<16x8xf32>
    %18 = arith.addf %13, %17 : vector<16x8xf32>
    %c1 = arith.constant 1 : index
    %c0_23 = arith.constant 0 : index
    %19 = vector.load %arg9[%c1, %c0_23] : memref<24x8xf32, #tpu.memory_space<vmem>>, vector<16x8xf32>
    %20 = vector.extract_strided_slice %6 {offsets = [1, 0, 0], sizes = [1, 8, 8], strides = [1, 1, 1]} : vector<3x8x8xf32> to vector<1x8x8xf32>
    %21 = vector.shape_cast %20 : vector<1x8x8xf32> to vector<8x8xf32>
    %cst_24 = arith.constant dense<0.000000e+00> : vector<16x8xf32>
    %22 = tpu.matmul %19, %21, %cst_24 {dimension_numbers = #tpu.dot_dimension_numbers<[1], [0], [0], [1], [0, 0, 1, 1], [], []>} : vector<16x8xf32>, vector<8x8xf32>, vector<16x8xf32> -> vector<16x8xf32>
    %23 = arith.addf %18, %22 : vector<16x8xf32>
    %c2_25 = arith.constant 2 : index
    %c0_26 = arith.constant 0 : index
    %24 = vector.load %arg9[%c2_25, %c0_26] : memref<24x8xf32, #tpu.memory_space<vmem>>, vector<16x8xf32>
    %25 = vector.extract_strided_slice %6 {offsets = [2, 0, 0], sizes = [1, 8, 8], strides = [1, 1, 1]} : vector<3x8x8xf32> to vector<1x8x8xf32>
    %26 = vector.shape_cast %25 : vector<1x8x8xf32> to vector<8x8xf32>
    %cst_27 = arith.constant dense<0.000000e+00> : vector<16x8xf32>
    %27 = tpu.matmul %24, %26, %cst_27 {dimension_numbers = #tpu.dot_dimension_numbers<[1], [0], [0], [1], [0, 0, 1, 1], [], []>} : vector<16x8xf32>, vector<8x8xf32>, vector<16x8xf32> -> vector<16x8xf32>
    %28 = arith.addf %23, %27 : vector<16x8xf32>
    %29 = vector.broadcast %8 : vector<1x8xf32> to vector<16x8xf32>
    %30 = arith.addf %28, %29 : vector<16x8xf32>
    %cst_28 = arith.constant 0.000000e+00 : f32
    %31 = vector.broadcast %cst_28 : f32 to vector<16x8xf32>
    %32 = arith.maximumf %30, %31 : vector<16x8xf32>
    %cst_29 = arith.constant 0.000000e+00 : f32
    %33 = vector.broadcast %cst_29 : f32 to vector<2x8xf32>
    %c0_30 = arith.constant 0 : index
    %c0_31 = arith.constant 0 : index
    %34 = vector.load %arg10[%c0_30, %c0_31] : memref<24x8xf32, #tpu.memory_space<vmem>>, vector<2x8xf32>
    tpu.vector_store %arg10[%c0_30, %c0_31], %33 {strides = array<i32>} : memref<24x8xf32, #tpu.memory_space<vmem>>, vector<2x8xf32>,
    %c2_32 = arith.constant 2 : index
    %c0_33 = arith.constant 0 : index
    %35 = vector.load %arg10[%c2_32, %c0_33] : memref<24x8xf32, #tpu.memory_space<vmem>>, vector<16x8xf32>
    tpu.vector_store %arg10[%c2_32, %c0_33], %32 {strides = array<i32>} : memref<24x8xf32, #tpu.memory_space<vmem>>, vector<16x8xf32>,
    %cst_34 = arith.constant 0.000000e+00 : f32
    %36 = vector.broadcast %cst_34 : f32 to vector<16x8xf32>
    %c0_35 = arith.constant 0 : index
    %c0_36 = arith.constant 0 : index
    %37 = vector.load %arg10[%c0_35, %c0_36] : memref<24x8xf32, #tpu.memory_space<vmem>>, vector<16x8xf32>
    %38 = vector.extract_strided_slice %10 {offsets = [0, 0, 0], sizes = [1, 8, 8], strides = [1, 1, 1]} : vector<3x8x8xf32> to vector<1x8x8xf32>
    %39 = vector.shape_cast %38 : vector<1x8x8xf32> to vector<8x8xf32>
    %cst_37 = arith.constant dense<0.000000e+00> : vector<16x8xf32>
    %40 = tpu.matmul %37, %39, %cst_37 {dimension_numbers = #tpu.dot_dimension_numbers<[1], [0], [0], [1], [0, 0, 1, 1], [], []>} : vector<16x8xf32>, vector<8x8xf32>, vector<16x8xf32> -> vector<16x8xf32>
    %41 = arith.addf %36, %40 : vector<16x8xf32>
    %c1_38 = arith.constant 1 : index
    %c0_39 = arith.constant 0 : index
    %42 = vector.load %arg10[%c1_38, %c0_39] : memref<24x8xf32, #tpu.memory_space<vmem>>, vector<16x8xf32>
    %43 = vector.extract_strided_slice %10 {offsets = [1, 0, 0], sizes = [1, 8, 8], strides = [1, 1, 1]} : vector<3x8x8xf32> to vector<1x8x8xf32>
    %44 = vector.shape_cast %43 : vector<1x8x8xf32> to vector<8x8xf32>
    %cst_40 = arith.constant dense<0.000000e+00> : vector<16x8xf32>
    %45 = tpu.matmul %42, %44, %cst_40 {dimension_numbers = #tpu.dot_dimension_numbers<[1], [0], [0], [1], [0, 0, 1, 1], [], []>} : vector<16x8xf32>, vector<8x8xf32>, vector<16x8xf32> -> vector<16x8xf32>
    %46 = arith.addf %41, %45 : vector<16x8xf32>
    %c2_41 = arith.constant 2 : index
    %c0_42 = arith.constant 0 : index
    %47 = vector.load %arg10[%c2_41, %c0_42] : memref<24x8xf32, #tpu.memory_space<vmem>>, vector<16x8xf32>
    %48 = vector.extract_strided_slice %10 {offsets = [2, 0, 0], sizes = [1, 8, 8], strides = [1, 1, 1]} : vector<3x8x8xf32> to vector<1x8x8xf32>
    %49 = vector.shape_cast %48 : vector<1x8x8xf32> to vector<8x8xf32>
    %cst_43 = arith.constant dense<0.000000e+00> : vector<16x8xf32>
    %50 = tpu.matmul %47, %49, %cst_43 {dimension_numbers = #tpu.dot_dimension_numbers<[1], [0], [0], [1], [0, 0, 1, 1], [], []>} : vector<16x8xf32>, vector<8x8xf32>, vector<16x8xf32> -> vector<16x8xf32>
    %51 = arith.addf %46, %50 : vector<16x8xf32>
    %52 = vector.broadcast %12 : vector<1x8xf32> to vector<16x8xf32>
    %53 = arith.addf %51, %52 : vector<16x8xf32>
    %cst_44 = arith.constant 0.000000e+00 : f32
    %54 = vector.broadcast %cst_44 : f32 to vector<16x8xf32>
    %55 = arith.maximumf %53, %54 : vector<16x8xf32>
    %c2_45 = arith.constant 2 : index
    %c0_46 = arith.constant 0 : index
    %56 = vector.load %arg9[%c2_45, %c0_46] : memref<24x8xf32, #tpu.memory_space<vmem>>, vector<16x8xf32>
    %c0_47 = arith.constant 0 : index
    %c0_48 = arith.constant 0 : index
    %c0_49 = arith.constant 0 : index
    %57 = vector.load %arg6[%c0_47, %c0_48, %c0_49] : memref<3x8x8xf32, #tpu.memory_space<vmem>>, vector<1x8x8xf32>
    %58 = vector.shape_cast %57 : vector<1x8x8xf32> to vector<8x8xf32>
    %cst_50 = arith.constant dense<0.000000e+00> : vector<16x8xf32>
    %59 = tpu.matmul %56, %58, %cst_50 {dimension_numbers = #tpu.dot_dimension_numbers<[1], [0], [0], [1], [0, 0, 1, 1], [], []>} : vector<16x8xf32>, vector<8x8xf32>, vector<16x8xf32> -> vector<16x8xf32>
    %c0_51 = arith.constant 0 : index
    %c0_52 = arith.constant 0 : index
    %c0_53 = arith.constant 0 : index
    %60 = vector.load %arg7[%c0_51, %c0_52, %c0_53] : memref<3x1x8xf32, #tpu.memory_space<vmem>>, vector<1x1x8xf32>
    %61 = vector.shape_cast %60 : vector<1x1x8xf32> to vector<1x8xf32>
    %62 = vector.broadcast %61 : vector<1x8xf32> to vector<16x8xf32>
    %63 = arith.addf %59, %62 : vector<16x8xf32>
    %64 = arith.addf %55, %63 : vector<16x8xf32>
    %c4 = arith.constant 4 : index
    %c0_54 = arith.constant 0 : index
    %65 = vector.load %arg9[%c4, %c0_54] : memref<24x8xf32, #tpu.memory_space<vmem>>, vector<16x8xf32>
    tpu.vector_store %arg9[%c4, %c0_54], %64 {strides = array<i32>} : memref<24x8xf32, #tpu.memory_space<vmem>>, vector<16x8xf32>,
    %cst_55 = arith.constant 0.000000e+00 : f32
    %66 = vector.broadcast %cst_55 : f32 to vector<4x8xf32>
    %c0_56 = arith.constant 0 : index
    %c0_57 = arith.constant 0 : index
    %67 = vector.load %arg9[%c0_56, %c0_57] : memref<24x8xf32, #tpu.memory_space<vmem>>, vector<4x8xf32>
    tpu.vector_store %arg9[%c0_56, %c0_57], %66 {strides = array<i32>} : memref<24x8xf32, #tpu.memory_space<vmem>>, vector<4x8xf32>,
    %c1_58 = arith.constant 1 : index
    %c0_59 = arith.constant 0 : index
    %c0_60 = arith.constant 0 : index
    %c0_61 = arith.constant 0 : index
    %68 = vector.load %arg2[%c1_58, %c0_59, %c0_60, %c0_61] : memref<3x3x8x8xf32, #tpu.memory_space<vmem>>, vector<1x3x8x8xf32>
    %69 = vector.shape_cast %68 : vector<1x3x8x8xf32> to vector<3x8x8xf32>
    %c1_62 = arith.constant 1 : index
    %c0_63 = arith.constant 0 : index
    %c0_64 = arith.constant 0 : index
    %70 = vector.load %arg3[%c1_62, %c0_63, %c0_64] : memref<3x1x8xf32, #tpu.memory_space<vmem>>, vector<1x1x8xf32>
    %71 = vector.shape_cast %70 : vector<1x1x8xf32> to vector<1x8xf32>
    %c1_65 = arith.constant 1 : index
    %c0_66 = arith.constant 0 : index
    %c0_67 = arith.constant 0 : index
    %c0_68 = arith.constant 0 : index
    %72 = vector.load %arg4[%c1_65, %c0_66, %c0_67, %c0_68] : memref<3x3x8x8xf32, #tpu.memory_space<vmem>>, vector<1x3x8x8xf32>
    %73 = vector.shape_cast %72 : vector<1x3x8x8xf32> to vector<3x8x8xf32>
    %c1_69 = arith.constant 1 : index
    %c0_70 = arith.constant 0 : index
    %c0_71 = arith.constant 0 : index
    %74 = vector.load %arg5[%c1_69, %c0_70, %c0_71] : memref<3x1x8xf32, #tpu.memory_space<vmem>>, vector<1x1x8xf32>
    %75 = vector.shape_cast %74 : vector<1x1x8xf32> to vector<1x8xf32>
    %cst_72 = arith.constant 0.000000e+00 : f32
    %76 = vector.broadcast %cst_72 : f32 to vector<16x8xf32>
    %c0_73 = arith.constant 0 : index
    %c0_74 = arith.constant 0 : index
    %77 = vector.load %arg9[%c0_73, %c0_74] : memref<24x8xf32, #tpu.memory_space<vmem>>, vector<16x8xf32>
    %78 = vector.extract_strided_slice %69 {offsets = [0, 0, 0], sizes = [1, 8, 8], strides = [1, 1, 1]} : vector<3x8x8xf32> to vector<1x8x8xf32>
    %79 = vector.shape_cast %78 : vector<1x8x8xf32> to vector<8x8xf32>
    %cst_75 = arith.constant dense<0.000000e+00> : vector<16x8xf32>
    %80 = tpu.matmul %77, %79, %cst_75 {dimension_numbers = #tpu.dot_dimension_numbers<[1], [0], [0], [1], [0, 0, 1, 1], [], []>} : vector<16x8xf32>, vector<8x8xf32>, vector<16x8xf32> -> vector<16x8xf32>
    %81 = arith.addf %76, %80 : vector<16x8xf32>
    %c2_76 = arith.constant 2 : index
    %c0_77 = arith.constant 0 : index
    %82 = vector.load %arg9[%c2_76, %c0_77] : memref<24x8xf32, #tpu.memory_space<vmem>>, vector<16x8xf32>
    %83 = vector.extract_strided_slice %69 {offsets = [1, 0, 0], sizes = [1, 8, 8], strides = [1, 1, 1]} : vector<3x8x8xf32> to vector<1x8x8xf32>
    %84 = vector.shape_cast %83 : vector<1x8x8xf32> to vector<8x8xf32>
    %cst_78 = arith.constant dense<0.000000e+00> : vector<16x8xf32>
    %85 = tpu.matmul %82, %84, %cst_78 {dimension_numbers = #tpu.dot_dimension_numbers<[1], [0], [0], [1], [0, 0, 1, 1], [], []>} : vector<16x8xf32>, vector<8x8xf32>, vector<16x8xf32> -> vector<16x8xf32>
    %86 = arith.addf %81, %85 : vector<16x8xf32>
    %c4_79 = arith.constant 4 : index
    %c0_80 = arith.constant 0 : index
    %87 = vector.load %arg9[%c4_79, %c0_80] : memref<24x8xf32, #tpu.memory_space<vmem>>, vector<16x8xf32>
    %88 = vector.extract_strided_slice %69 {offsets = [2, 0, 0], sizes = [1, 8, 8], strides = [1, 1, 1]} : vector<3x8x8xf32> to vector<1x8x8xf32>
    %89 = vector.shape_cast %88 : vector<1x8x8xf32> to vector<8x8xf32>
    %cst_81 = arith.constant dense<0.000000e+00> : vector<16x8xf32>
    %90 = tpu.matmul %87, %89, %cst_81 {dimension_numbers = #tpu.dot_dimension_numbers<[1], [0], [0], [1], [0, 0, 1, 1], [], []>} : vector<16x8xf32>, vector<8x8xf32>, vector<16x8xf32> -> vector<16x8xf32>
    %91 = arith.addf %86, %90 : vector<16x8xf32>
    %92 = vector.broadcast %71 : vector<1x8xf32> to vector<16x8xf32>
    %93 = arith.addf %91, %92 : vector<16x8xf32>
    %cst_82 = arith.constant 0.000000e+00 : f32
    %94 = vector.broadcast %cst_82 : f32 to vector<16x8xf32>
    %95 = arith.maximumf %93, %94 : vector<16x8xf32>
    %cst_83 = arith.constant 0.000000e+00 : f32
    %96 = vector.broadcast %cst_83 : f32 to vector<4x8xf32>
    %c0_84 = arith.constant 0 : index
    %c0_85 = arith.constant 0 : index
    %97 = vector.load %arg10[%c0_84, %c0_85] : memref<24x8xf32, #tpu.memory_space<vmem>>, vector<4x8xf32>
    tpu.vector_store %arg10[%c0_84, %c0_85], %96 {strides = array<i32>} : memref<24x8xf32, #tpu.memory_space<vmem>>, vector<4x8xf32>,
    %c4_86 = arith.constant 4 : index
    %c0_87 = arith.constant 0 : index
    %98 = vector.load %arg10[%c4_86, %c0_87] : memref<24x8xf32, #tpu.memory_space<vmem>>, vector<16x8xf32>
    tpu.vector_store %arg10[%c4_86, %c0_87], %95 {strides = array<i32>} : memref<24x8xf32, #tpu.memory_space<vmem>>, vector<16x8xf32>,
    %cst_88 = arith.constant 0.000000e+00 : f32
    %99 = vector.broadcast %cst_88 : f32 to vector<16x8xf32>
    %c0_89 = arith.constant 0 : index
    %c0_90 = arith.constant 0 : index
    %100 = vector.load %arg10[%c0_89, %c0_90] : memref<24x8xf32, #tpu.memory_space<vmem>>, vector<16x8xf32>
    %101 = vector.extract_strided_slice %73 {offsets = [0, 0, 0], sizes = [1, 8, 8], strides = [1, 1, 1]} : vector<3x8x8xf32> to vector<1x8x8xf32>
    %102 = vector.shape_cast %101 : vector<1x8x8xf32> to vector<8x8xf32>
    %cst_91 = arith.constant dense<0.000000e+00> : vector<16x8xf32>
    %103 = tpu.matmul %100, %102, %cst_91 {dimension_numbers = #tpu.dot_dimension_numbers<[1], [0], [0], [1], [0, 0, 1, 1], [], []>} : vector<16x8xf32>, vector<8x8xf32>, vector<16x8xf32> -> vector<16x8xf32>
    %104 = arith.addf %99, %103 : vector<16x8xf32>
    %c2_92 = arith.constant 2 : index
    %c0_93 = arith.constant 0 : index
    %105 = vector.load %arg10[%c2_92, %c0_93] : memref<24x8xf32, #tpu.memory_space<vmem>>, vector<16x8xf32>
    %106 = vector.extract_strided_slice %73 {offsets = [1, 0, 0], sizes = [1, 8, 8], strides = [1, 1, 1]} : vector<3x8x8xf32> to vector<1x8x8xf32>
    %107 = vector.shape_cast %106 : vector<1x8x8xf32> to vector<8x8xf32>
    %cst_94 = arith.constant dense<0.000000e+00> : vector<16x8xf32>
    %108 = tpu.matmul %105, %107, %cst_94 {dimension_numbers = #tpu.dot_dimension_numbers<[1], [0], [0], [1], [0, 0, 1, 1], [], []>} : vector<16x8xf32>, vector<8x8xf32>, vector<16x8xf32> -> vector<16x8xf32>
    %109 = arith.addf %104, %108 : vector<16x8xf32>
    %c4_95 = arith.constant 4 : index
    %c0_96 = arith.constant 0 : index
    %110 = vector.load %arg10[%c4_95, %c0_96] : memref<24x8xf32, #tpu.memory_space<vmem>>, vector<16x8xf32>
    %111 = vector.extract_strided_slice %73 {offsets = [2, 0, 0], sizes = [1, 8, 8], strides = [1, 1, 1]} : vector<3x8x8xf32> to vector<1x8x8xf32>
    %112 = vector.shape_cast %111 : vector<1x8x8xf32> to vector<8x8xf32>
    %cst_97 = arith.constant dense<0.000000e+00> : vector<16x8xf32>
    %113 = tpu.matmul %110, %112, %cst_97 {dimension_numbers = #tpu.dot_dimension_numbers<[1], [0], [0], [1], [0, 0, 1, 1], [], []>} : vector<16x8xf32>, vector<8x8xf32>, vector<16x8xf32> -> vector<16x8xf32>
    %114 = arith.addf %109, %113 : vector<16x8xf32>
    %115 = vector.broadcast %75 : vector<1x8xf32> to vector<16x8xf32>
    %116 = arith.addf %114, %115 : vector<16x8xf32>
    %cst_98 = arith.constant 0.000000e+00 : f32
    %117 = vector.broadcast %cst_98 : f32 to vector<16x8xf32>
    %118 = arith.maximumf %116, %117 : vector<16x8xf32>
    %c4_99 = arith.constant 4 : index
    %c0_100 = arith.constant 0 : index
    %119 = vector.load %arg9[%c4_99, %c0_100] : memref<24x8xf32, #tpu.memory_space<vmem>>, vector<16x8xf32>
    %120 = arith.addf %118, %119 : vector<16x8xf32>
    %c8 = arith.constant 8 : index
    %c0_101 = arith.constant 0 : index
    %121 = vector.load %arg9[%c8, %c0_101] : memref<24x8xf32, #tpu.memory_space<vmem>>, vector<16x8xf32>
    tpu.vector_store %arg9[%c8, %c0_101], %120 {strides = array<i32>} : memref<24x8xf32, #tpu.memory_space<vmem>>, vector<16x8xf32>,
    %cst_102 = arith.constant 0.000000e+00 : f32
    %122 = vector.broadcast %cst_102 : f32 to vector<8x8xf32>
    %c0_103 = arith.constant 0 : index
    %c0_104 = arith.constant 0 : index
    %123 = vector.load %arg9[%c0_103, %c0_104] : memref<24x8xf32, #tpu.memory_space<vmem>>, vector<8x8xf32>
    tpu.vector_store %arg9[%c0_103, %c0_104], %122 {strides = array<i32>} : memref<24x8xf32, #tpu.memory_space<vmem>>, vector<8x8xf32>,
    %c2_105 = arith.constant 2 : index
    %c0_106 = arith.constant 0 : index
    %c0_107 = arith.constant 0 : index
    %c0_108 = arith.constant 0 : index
    %124 = vector.load %arg2[%c2_105, %c0_106, %c0_107, %c0_108] : memref<3x3x8x8xf32, #tpu.memory_space<vmem>>, vector<1x3x8x8xf32>
    %125 = vector.shape_cast %124 : vector<1x3x8x8xf32> to vector<3x8x8xf32>
    %c2_109 = arith.constant 2 : index
    %c0_110 = arith.constant 0 : index
    %c0_111 = arith.constant 0 : index
    %126 = vector.load %arg3[%c2_109, %c0_110, %c0_111] : memref<3x1x8xf32, #tpu.memory_space<vmem>>, vector<1x1x8xf32>
    %127 = vector.shape_cast %126 : vector<1x1x8xf32> to vector<1x8xf32>
    %c2_112 = arith.constant 2 : index
    %c0_113 = arith.constant 0 : index
    %c0_114 = arith.constant 0 : index
    %c0_115 = arith.constant 0 : index
    %128 = vector.load %arg4[%c2_112, %c0_113, %c0_114, %c0_115] : memref<3x3x8x8xf32, #tpu.memory_space<vmem>>, vector<1x3x8x8xf32>
    %129 = vector.shape_cast %128 : vector<1x3x8x8xf32> to vector<3x8x8xf32>
    %c2_116 = arith.constant 2 : index
    %c0_117 = arith.constant 0 : index
    %c0_118 = arith.constant 0 : index
    %130 = vector.load %arg5[%c2_116, %c0_117, %c0_118] : memref<3x1x8xf32, #tpu.memory_space<vmem>>, vector<1x1x8xf32>
    %131 = vector.shape_cast %130 : vector<1x1x8xf32> to vector<1x8xf32>
    %cst_119 = arith.constant 0.000000e+00 : f32
    %132 = vector.broadcast %cst_119 : f32 to vector<16x8xf32>
    %c0_120 = arith.constant 0 : index
    %c0_121 = arith.constant 0 : index
    %133 = vector.load %arg9[%c0_120, %c0_121] : memref<24x8xf32, #tpu.memory_space<vmem>>, vector<16x8xf32>
    %134 = vector.extract_strided_slice %125 {offsets = [0, 0, 0], sizes = [1, 8, 8], strides = [1, 1, 1]} : vector<3x8x8xf32> to vector<1x8x8xf32>
    %135 = vector.shape_cast %134 : vector<1x8x8xf32> to vector<8x8xf32>
    %cst_122 = arith.constant dense<0.000000e+00> : vector<16x8xf32>
    %136 = tpu.matmul %133, %135, %cst_122 {dimension_numbers = #tpu.dot_dimension_numbers<[1], [0], [0], [1], [0, 0, 1, 1], [], []>} : vector<16x8xf32>, vector<8x8xf32>, vector<16x8xf32> -> vector<16x8xf32>
    %137 = arith.addf %132, %136 : vector<16x8xf32>
    %c4_123 = arith.constant 4 : index
    %c0_124 = arith.constant 0 : index
    %138 = vector.load %arg9[%c4_123, %c0_124] : memref<24x8xf32, #tpu.memory_space<vmem>>, vector<16x8xf32>
    %139 = vector.extract_strided_slice %125 {offsets = [1, 0, 0], sizes = [1, 8, 8], strides = [1, 1, 1]} : vector<3x8x8xf32> to vector<1x8x8xf32>
    %140 = vector.shape_cast %139 : vector<1x8x8xf32> to vector<8x8xf32>
    %cst_125 = arith.constant dense<0.000000e+00> : vector<16x8xf32>
    %141 = tpu.matmul %138, %140, %cst_125 {dimension_numbers = #tpu.dot_dimension_numbers<[1], [0], [0], [1], [0, 0, 1, 1], [], []>} : vector<16x8xf32>, vector<8x8xf32>, vector<16x8xf32> -> vector<16x8xf32>
    %142 = arith.addf %137, %141 : vector<16x8xf32>
    %c8_126 = arith.constant 8 : index
    %c0_127 = arith.constant 0 : index
    %143 = vector.load %arg9[%c8_126, %c0_127] : memref<24x8xf32, #tpu.memory_space<vmem>>, vector<16x8xf32>
    %144 = vector.extract_strided_slice %125 {offsets = [2, 0, 0], sizes = [1, 8, 8], strides = [1, 1, 1]} : vector<3x8x8xf32> to vector<1x8x8xf32>
    %145 = vector.shape_cast %144 : vector<1x8x8xf32> to vector<8x8xf32>
    %cst_128 = arith.constant dense<0.000000e+00> : vector<16x8xf32>
    %146 = tpu.matmul %143, %145, %cst_128 {dimension_numbers = #tpu.dot_dimension_numbers<[1], [0], [0], [1], [0, 0, 1, 1], [], []>} : vector<16x8xf32>, vector<8x8xf32>, vector<16x8xf32> -> vector<16x8xf32>
    %147 = arith.addf %142, %146 : vector<16x8xf32>
    %148 = vector.broadcast %127 : vector<1x8xf32> to vector<16x8xf32>
    %149 = arith.addf %147, %148 : vector<16x8xf32>
    %cst_129 = arith.constant 0.000000e+00 : f32
    %150 = vector.broadcast %cst_129 : f32 to vector<16x8xf32>
    %151 = arith.maximumf %149, %150 : vector<16x8xf32>
    %cst_130 = arith.constant 0.000000e+00 : f32
    %152 = vector.broadcast %cst_130 : f32 to vector<8x8xf32>
    %c0_131 = arith.constant 0 : index
    %c0_132 = arith.constant 0 : index
    %153 = vector.load %arg10[%c0_131, %c0_132] : memref<24x8xf32, #tpu.memory_space<vmem>>, vector<8x8xf32>
    tpu.vector_store %arg10[%c0_131, %c0_132], %152 {strides = array<i32>} : memref<24x8xf32, #tpu.memory_space<vmem>>, vector<8x8xf32>,
    %c8_133 = arith.constant 8 : index
    %c0_134 = arith.constant 0 : index
    %154 = vector.load %arg10[%c8_133, %c0_134] : memref<24x8xf32, #tpu.memory_space<vmem>>, vector<16x8xf32>
    tpu.vector_store %arg10[%c8_133, %c0_134], %151 {strides = array<i32>} : memref<24x8xf32, #tpu.memory_space<vmem>>, vector<16x8xf32>,
    %cst_135 = arith.constant 0.000000e+00 : f32
    %155 = vector.broadcast %cst_135 : f32 to vector<16x8xf32>
    %c0_136 = arith.constant 0 : index
    %c0_137 = arith.constant 0 : index
    %156 = vector.load %arg10[%c0_136, %c0_137] : memref<24x8xf32, #tpu.memory_space<vmem>>, vector<16x8xf32>
    %157 = vector.extract_strided_slice %129 {offsets = [0, 0, 0], sizes = [1, 8, 8], strides = [1, 1, 1]} : vector<3x8x8xf32> to vector<1x8x8xf32>
    %158 = vector.shape_cast %157 : vector<1x8x8xf32> to vector<8x8xf32>
    %cst_138 = arith.constant dense<0.000000e+00> : vector<16x8xf32>
    %159 = tpu.matmul %156, %158, %cst_138 {dimension_numbers = #tpu.dot_dimension_numbers<[1], [0], [0], [1], [0, 0, 1, 1], [], []>} : vector<16x8xf32>, vector<8x8xf32>, vector<16x8xf32> -> vector<16x8xf32>
    %160 = arith.addf %155, %159 : vector<16x8xf32>
    %c4_139 = arith.constant 4 : index
    %c0_140 = arith.constant 0 : index
    %161 = vector.load %arg10[%c4_139, %c0_140] : memref<24x8xf32, #tpu.memory_space<vmem>>, vector<16x8xf32>
    %162 = vector.extract_strided_slice %129 {offsets = [1, 0, 0], sizes = [1, 8, 8], strides = [1, 1, 1]} : vector<3x8x8xf32> to vector<1x8x8xf32>
    %163 = vector.shape_cast %162 : vector<1x8x8xf32> to vector<8x8xf32>
    %cst_141 = arith.constant dense<0.000000e+00> : vector<16x8xf32>
    %164 = tpu.matmul %161, %163, %cst_141 {dimension_numbers = #tpu.dot_dimension_numbers<[1], [0], [0], [1], [0, 0, 1, 1], [], []>} : vector<16x8xf32>, vector<8x8xf32>, vector<16x8xf32> -> vector<16x8xf32>
    %165 = arith.addf %160, %164 : vector<16x8xf32>
    %c8_142 = arith.constant 8 : index
    %c0_143 = arith.constant 0 : index
    %166 = vector.load %arg10[%c8_142, %c0_143] : memref<24x8xf32, #tpu.memory_space<vmem>>, vector<16x8xf32>
    %167 = vector.extract_strided_slice %129 {offsets = [2, 0, 0], sizes = [1, 8, 8], strides = [1, 1, 1]} : vector<3x8x8xf32> to vector<1x8x8xf32>
    %168 = vector.shape_cast %167 : vector<1x8x8xf32> to vector<8x8xf32>
    %cst_144 = arith.constant dense<0.000000e+00> : vector<16x8xf32>
    %169 = tpu.matmul %166, %168, %cst_144 {dimension_numbers = #tpu.dot_dimension_numbers<[1], [0], [0], [1], [0, 0, 1, 1], [], []>} : vector<16x8xf32>, vector<8x8xf32>, vector<16x8xf32> -> vector<16x8xf32>
    %170 = arith.addf %165, %169 : vector<16x8xf32>
    %171 = vector.broadcast %131 : vector<1x8xf32> to vector<16x8xf32>
    %172 = arith.addf %170, %171 : vector<16x8xf32>
    %c8_145 = arith.constant 8 : index
    %c0_146 = arith.constant 0 : index
    %173 = vector.load %arg9[%c8_145, %c0_146] : memref<24x8xf32, #tpu.memory_space<vmem>>, vector<16x8xf32>
    %c2_147 = arith.constant 2 : index
    %c0_148 = arith.constant 0 : index
    %c0_149 = arith.constant 0 : index
    %174 = vector.load %arg6[%c2_147, %c0_148, %c0_149] : memref<3x8x8xf32, #tpu.memory_space<vmem>>, vector<1x8x8xf32>
    %175 = vector.shape_cast %174 : vector<1x8x8xf32> to vector<8x8xf32>
    %cst_150 = arith.constant dense<0.000000e+00> : vector<16x8xf32>
    %176 = tpu.matmul %173, %175, %cst_150 {dimension_numbers = #tpu.dot_dimension_numbers<[1], [0], [0], [1], [0, 0, 1, 1], [], []>} : vector<16x8xf32>, vector<8x8xf32>, vector<16x8xf32> -> vector<16x8xf32>
    %c2_151 = arith.constant 2 : index
    %c0_152 = arith.constant 0 : index
    %c0_153 = arith.constant 0 : index
    %177 = vector.load %arg7[%c2_151, %c0_152, %c0_153] : memref<3x1x8xf32, #tpu.memory_space<vmem>>, vector<1x1x8xf32>
    %178 = vector.shape_cast %177 : vector<1x1x8xf32> to vector<1x8xf32>
    %179 = vector.broadcast %178 : vector<1x8xf32> to vector<16x8xf32>
    %180 = arith.addf %176, %179 : vector<16x8xf32>
    %181 = arith.addf %172, %180 : vector<16x8xf32>
    %182 = vector.extract_strided_slice %181 {offsets = [0, 0], sizes = [16, 2], strides = [1, 1]} : vector<16x8xf32> to vector<16x2xf32>
    %c0_154 = arith.constant 0 : index
    %c0_155 = arith.constant 0 : index
    %c0_156 = arith.constant 0 : index
    %183 = vector.load %arg8[%c0_154, %c0_155, %c0_156] : memref<1x16x2xf32, #tpu.memory_space<vmem>>, vector<1x16x2xf32>
    %184 = vector.shape_cast %183 : vector<1x16x2xf32> to vector<16x2xf32>
    %185 = vector.shape_cast %182 : vector<16x2xf32> to vector<1x16x2xf32>
    tpu.vector_store %arg8[%c0_154, %c0_155, %c0_156], %185 {strides = array<i32>} : memref<1x16x2xf32, #tpu.memory_space<vmem>>, vector<1x16x2xf32>,
    return
  }
  func.func @transform_0(%arg0: i32) -> (i32, i32, i32) {
    %c0_i32 = arith.constant 0 : i32
    %c0_i32_0 = arith.constant 0 : i32
    %c0_i32_1 = arith.constant 0 : i32
    return %arg0, %c0_i32, %c0_i32_0 : i32, i32, i32
  }
  func.func @transform_1(%arg0: i32) -> (i32, i32, i32, i32) {
    %c0_i32 = arith.constant 0 : i32
    %c0_i32_0 = arith.constant 0 : i32
    %c0_i32_1 = arith.constant 0 : i32
    %c0_i32_2 = arith.constant 0 : i32
    %c0_i32_3 = arith.constant 0 : i32
    return %c0_i32, %c0_i32_0, %c0_i32_1, %c0_i32_2 : i32, i32, i32, i32
  }
  func.func @transform_2(%arg0: i32) -> (i32, i32, i32) {
    %c0_i32 = arith.constant 0 : i32
    %c0_i32_0 = arith.constant 0 : i32
    %c0_i32_1 = arith.constant 0 : i32
    %c0_i32_2 = arith.constant 0 : i32
    return %c0_i32, %c0_i32_0, %c0_i32_1 : i32, i32, i32
  }
  func.func @transform_3(%arg0: i32) -> (i32, i32, i32, i32) {
    %c0_i32 = arith.constant 0 : i32
    %c0_i32_0 = arith.constant 0 : i32
    %c0_i32_1 = arith.constant 0 : i32
    %c0_i32_2 = arith.constant 0 : i32
    %c0_i32_3 = arith.constant 0 : i32
    return %c0_i32, %c0_i32_0, %c0_i32_1, %c0_i32_2 : i32, i32, i32, i32
  }
  func.func @transform_4(%arg0: i32) -> (i32, i32, i32) {
    %c0_i32 = arith.constant 0 : i32
    %c0_i32_0 = arith.constant 0 : i32
    %c0_i32_1 = arith.constant 0 : i32
    %c0_i32_2 = arith.constant 0 : i32
    return %c0_i32, %c0_i32_0, %c0_i32_1 : i32, i32, i32
  }
  func.func @transform_5(%arg0: i32) -> (i32, i32, i32) {
    %c0_i32 = arith.constant 0 : i32
    %c0_i32_0 = arith.constant 0 : i32
    %c0_i32_1 = arith.constant 0 : i32
    %c0_i32_2 = arith.constant 0 : i32
    return %c0_i32, %c0_i32_0, %c0_i32_1 : i32, i32, i32
  }
  func.func @transform_6(%arg0: i32) -> (i32, i32, i32) {
    %c0_i32 = arith.constant 0 : i32
    %c0_i32_0 = arith.constant 0 : i32
    %c0_i32_1 = arith.constant 0 : i32
    %c0_i32_2 = arith.constant 0 : i32
    return %c0_i32, %c0_i32_0, %c0_i32_1 : i32, i32, i32
  }
  func.func @transform_7(%arg0: i32) -> (i32, i32, i32) {
    %c0_i32 = arith.constant 0 : i32
    %c0_i32_0 = arith.constant 0 : i32
    %c0_i32_1 = arith.constant 0 : i32
    return %arg0, %c0_i32, %c0_i32_0 : i32, i32, i32
  }
}

</mosaic_0001>

<bundles_post_ra>
// kernel: tpu_custom_call.1
= control target key start
LH: loop header
LB: loop body
LE: loop exit
PB: predicated region body
PF: predicated region fallthrough
CT: control target
= control target key end

     0   :  { %12 = vsyncpa [#allocation5], 0  ;;  %s2808_s0 = inlined_call_operand.vmem [shape: f32[2,16,4], index: 0, kind: input, shape index: {}]   ;;  %s2809_s1 = inlined_call_operand.hbm [shape: f32[3,3,8,8], index: 1, kind: input, shape index: {}]   ;;  %s2810_s2 = inlined_call_operand.vmem [shape: f32[3,1,8], index: 2, kind: input, shape index: {}]   ;;  %s2811_s3 = inlined_call_operand.hbm [shape: f32[3,3,8,8], index: 3, kind: input, shape index: {}]   ;;  %s2812_s4 = inlined_call_operand.vmem [shape: f32[3,1,8], index: 4, kind: input, shape index: {}]   ;;  %s2813_s5 = inlined_call_operand.vmem [shape: f32[3,8,8], index: 5, kind: input, shape index: {}]   ;;  %s2814_s6 = inlined_call_operand.vmem [shape: f32[3,1,8], index: 6, kind: input, shape index: {}]   ;;  %s2815_s7 = inlined_call_operand.vmem [shape: f32[2,16,2], index: 7, kind: output, shape index: {}]  }
   0x1   :  { %13 = vsyncpa [#allocation7], 0  ;;  %s2613_s24 = smov 0  }
   0x2 LB: > { %s2619_s25 = sadd.s32 4294967295, %s2566_s24   ;;  %p2205_p0 = scmp.ge.s32.totalorder %s2566_s24, 1  ;;  %s2566_s24 = sphi %s2613_s24, %s19_s24  }
   0x3   : > { %p202_p1 = scmp.lt.s32.totalorder %s2566_s24, 3  ;;  %s2568_s26 = smov [#allocation4]  }
   0x4   : > { %s214_s27 = sshll.u32 %s2568_s26, 4  ;;  %p2816_p3 = scmp.eq.s32.totalorder %s2619_s25, 0  ;;  %s215_s27 = int_to_ptr.vmem [resolvable:$true] %s214_s27 }
   0x5   : > { %p2623_p2 = pnand %p2205_p0, %p202_p1  ;;  %s2569_s29 = smov [#allocation6]  }
   0x6   : > { %s230_s30 = sshll.u32 %s2569_s29, 4  ;;  %s2496_s11 = scalar_lea.hbm %s2809_s1, 1152  ;;  %s2636_s30 = int_to_ptr.vmem [resolvable:$true] %s230_s30 }
   0x7   : > { %s2818_s28 = scalar_select %p2623_p2, 1, 0 }
   0x8   : > { %p2472_p4 = pneg %p2623_p2  ;;  %p2497_p6 = scmp.ne.s32.totalorder %s2809_s1, %s2496_s11 }
   0x9   : > { %p2503_p10 = scmp.lt.u32.totalorder %s2496_s11, %s2809_s1 }
   0xa   : > { %p2632_p5 = pnand %p2816_p3, %p2472_p4 }
   0xc   : > { %p2498_p7 = pneg %p2632_p5 }
   0xe   : > { %p2499_p8 = pnand %p2498_p7, %p2497_p6 }
  0x10   : > { %p2500_p9 = pneg %p2499_p8 }
  0x12   : > { %p2505_p11 = pnand %p2503_p10, %p2500_p9 }
  0x14   : > { %2508 = shalt.err (!%p2505_p11)
}
  0x15   : > { %s2509_s16 = scalar_lea.vmem %s215_s27, 1152  ;;  %p2517_p1 = scmp.lt.s32.totalorder %s215_s27, %s215_s27 }
  0x16   : > { %p2510_p12 = scmp.ne.s32.totalorder %s215_s27, %s2509_s16  ;;  %p2518_p4 = scmp.lt.s32.totalorder %s2509_s16, %s2509_s16 }
  0x18   : > { %p2512_p13 = pnand %p2510_p12, %p2498_p7  ;;  %p2519_p3 = por %p2518_p4, %p2517_p1 }
  0x1a   : > { %p2513_p0 = pneg %p2512_p13 }
  0x1c   : > { %p2520_p2 = pnand %p2519_p3, %p2513_p0 }
  0x1e   : > { %2523 = shalt.err (!%p2520_p2)
}
  0x1f   : > { %s2570_s17 = smov 128   ;;  %s2571_s18 = smov 8  }
  0x20   : > { %2475 = dma.hbm_to_vmem [thread:$0]  (!%p2632_p5), %s2809_s1, 1152, %s215_s27, [#allocation5], %s2570_s17, %s2570_s17, %s2571_s18  }
  0x21   : > { %s2524_s23 = scalar_lea.hbm %s2811_s3, 1152 }
  0x22   : > { %p2525_p6 = scmp.ne.s32.totalorder %s2811_s3, %s2524_s23  ;;  %p2531_p8 = scmp.lt.u32.totalorder %s2524_s23, %s2811_s3 }
  0x24   : > { %p2527_p2 = pnand %p2525_p6, %p2498_p7 }
  0x26   : > { %p2528_p3 = pneg %p2527_p2 }
  0x28   : > { %p2533_p9 = pnand %p2531_p8, %p2528_p3 }
  0x2a   : > { %2536 = shalt.err (!%p2533_p9)
}
  0x2b   : > { %s2537_s27 = scalar_lea.vmem %s2636_s30, 1152  ;;  %p2545_p13 = scmp.lt.s32.totalorder %s2636_s30, %s2636_s30 }
  0x2c   : > { %p2538_p10 = scmp.ne.s32.totalorder %s2636_s30, %s2537_s27  ;;  %p2546_p0 = scmp.lt.s32.totalorder %s2537_s27, %s2537_s27 }
  0x2e   : > { %p2540_p11 = pnand %p2538_p10, %p2498_p7  ;;  %p2547_p1 = por %p2546_p0, %p2545_p13 }
  0x30   : > { %p2541_p12 = pneg %p2540_p11 }
  0x32   : > { %p2548_p4 = pnand %p2547_p1, %p2541_p12 }
  0x34   : > { %2551 = shalt.err (!%p2548_p4)
}
  0x35   : > { %2478 = dma.hbm_to_vmem [thread:$0]  (!%p2632_p5), %s2811_s3, 1152, %s2636_s30, [#allocation7], %s2570_s17, %s2570_s17, %s2571_s18  }
  0x36   : > { %p2820_p6 = scmp.ne.s32.totalorder %s2818_s28, 0 }
  0x37   : > { %p2821_p2 = scmp.eq.s32.totalorder (!%p2820_p6), %s2619_s25, 0 }
  0x38   : > { %263 = sbr.rel (%p2820_p6) target bundleno = 1532 (0x5fc), region = 48 }
  0x3f   : > { %2557 = dma.done.wait (%p2821_p2), [#allocation5], 1152   ;;  %p2822_p7 = pmov %p2821_p2 }
  0x40   : > { %p2823_p3 = pmov %p2821_p2 }
  0x41   : > { %2559 = vsyncadd (%p2822_p7), [#allocation5], 4294966144 }
  0x42   : > { %2561 = dma.done.wait (%p2823_p3), [#allocation7], 1152   ;;  %p2824_p8 = pmov %p2821_p2 }
  0x43   : > { %p299_p9 = scmp.lt.s32.totalorder %s2619_s25, 1  ;;  %vm309_vm0 = vcmask 64512   ;;  %v2572_v0 = vmov 0.0   ;;  %vm315_vm1 = vcmask 31744   ;;  %v318_v1 = vld [vmem:[#allocation4] sm:$0xff]  ;;  %v320_v3 = vld [vmem:[#allocation4 + $0x10] sm:$0xff] }
  0x44   : > { %2563 = vsyncadd (%p2824_p8), [#allocation7], 4294966144  ;;  %310 = vst.msk [vmem:[#allocation2] sm:$0xff] %vm309_vm0, %v2572_v0  ;;  %2339 = vmatprep.subr.mxu0 %v318_v1  ;;  %v319_v5 = vld [vmem:[#allocation4 + $0x8] sm:$0xff]  ;;  %vm587_vm2 = vcmask 58368   ;;  %v323_v12 = vld [vmem:[#allocation6 + $0x8] sm:$0xff] }
  0x45   : > { %311 = vst.msk [vmem:[#allocation2 + $0x8] sm:$0xff] %vm309_vm0, %v2572_v0  ;;  %312 = vst.msk [vmem:[#allocation2 + $0x10] sm:$0xff] %vm309_vm0, %v2572_v0  ;;  %s2826_s25 = smov (!%p299_p9, %s2619_s25), 1  ;;  %2340 = vmatpush3.msra.mxu0 %v318_v1  ;;  %2334 = vmatprep.subr.mxu1 %v319_v5  ;;  %v322_v13 = vld [vmem:[#allocation6] sm:$0xff]  ;;  %vm947_vm3 = vcmask 60416   ;;  %v854_v14 = vld [vmem:[%s2813_s5] sm:$0xff] }
  0x46   : > { %s2272_s28 = sshll.u32 %s2826_s25, 4  ;;  %2344 = vmatprep.subr.mxu0 %v320_v3  ;;  %2335 = vmatpush3.msra.mxu1 %v319_v5  ;;  %588 = vst.msk [vmem:[#allocation3] sm:$0x3] %vm587_vm2, %v2572_v0  ;;  %v2222_v17 = vld [vmem:[%s2810_s2] ss:$0 sm:$0xff]  ;;  %v951_v35 = vld [vmem:[#allocation4 + $0x20] sm:$0xff] }
  0x47   : > { %s303_s13 = scalar_lea.vmem %s2808_s0, %s2272_s28  ;;  %2349 = vmatprep.subr.mxu1 %v323_v12  ;;  %v324_v29 = vld [vmem:[#allocation6 + $0x10] sm:$0xff]  ;;  %v952_v52 = vld [vmem:[#allocation4 + $0x28] sm:$0xff]  ;;  %v956_v57 = vld [vmem:[#allocation6 + $0x18] sm:$0xff]  ;;  %s308_s16 = scalar_lea.vmem %s2815_s7, %s2272_s28  ;;  %vm2123_vm4 = vcmask 15360  }
  0x48   : > { %v313_v2 = vld [vmem:[%s303_s13] sm:$0xff]  ;;  %v314_v4 = vld [vmem:[%s303_s13 + $0x8] sm:$0xff]  ;;  %v957_v56 = vld [vmem:[#allocation6 + $0x20] sm:$0xff] }
  0x49   : > { %316 = vst.msk [vmem:[#allocation2 + $0x2] sm:$0xff] %vm315_vm1, %v313_v2  ;;  %317 = vst.msk [vmem:[#allocation2 + $0xa] sm:$0xff] %vm315_vm1, %v314_v4  ;;  %v950_v36 = vld [vmem:[#allocation4 + $0x18] sm:$0xff]  ;;  %v958_v5 = vld [vmem:[#allocation6 + $0x28] sm:$0xff] }
  0x4a   : > { %v2229_v37 = vld [vmem:[%s2812_s4] ss:$0 sm:$0xff]  ;;  %v2241_v58 = vld [vmem:[%s2810_s2 + $0x1] ss:$0 sm:$0xff] }
  0x4b   : > { %v2230_v38 = vld [vmem:[%s2814_s6] ss:$0 sm:$0xff] }
  0x50   : > { %v326_v6 = vld [vmem:[#allocation2] sm:$0xff]  ;;  %v327_v9 = vld [vmem:[#allocation2 + $0x8] sm:$0xff] }
  0x51   : > { %v328_v7 = vld [vmem:[#allocation2 + $0x1] sm:$0xff]  ;;  %2341 = vmatprep.mubr.msk.f32.mxu0 %vm309_vm0, %v326_v6  ;;  %v329_v10 = vld [vmem:[#allocation2 + $0x9] sm:$0xff] }
  0x52   : > { %v492_v8 = vld [vmem:[#allocation2 + $0x2] sm:$0xff]  ;;  %2336 = vmatprep.mubr.msk.f32.mxu1 %vm309_vm0, %v328_v7  ;;  %2342 = vmatmul.mubr.msk.f32.vlgmr.msra.gmra.mrb[0].mxu0 %vm309_vm0, %v327_v9  ;;  %v493_v11 = vld [vmem:[#allocation2 + $0xa] sm:$0xff] }
  0x53   : > { %2337 = vmatmul.mubr.msk.f32.vlgmr.msra.gmra.mrb[0].mxu1 %vm309_vm0, %v329_v10  ;;  %2345 = vmatpush3.msra.mxu0 %v320_v3  ;;  %948 = vst.msk [vmem:[#allocation2] sm:$0xf] %vm947_vm3, %v2572_v0  ;;  %v1495_v9 = vld [vmem:[#allocation4 + $0x38] sm:$0xff]  ;;  %v1494_v10 = vld [vmem:[#allocation4 + $0x30] sm:$0xff] }
  0x54   : > { %2346 = vmatprep.mubr.msk.f32.mxu0 %vm309_vm0, %v492_v8  ;;  %2350 = vmatpush3.msra.mxu1 %v323_v12 }
  0x55   : > { %2354 = vmatprep.subr.mxu1 %v322_v13  ;;  %2364 = vmatprep.subr.mxu0 %v854_v14 }
  0x5a   : > { %2347 = vmatmul.mubr.msk.f32.vlgmr.msra.gmra.mrb[0].mxu0 %vm309_vm0, %v493_v11 }
  0x5b   : > { %2366 = vmatprep.mubr.msk.f32.mxu0 %vm309_vm0, %v492_v8  ;;  %2365 = vmatpush3.msra.mxu0 %v854_v14 }
  0x5c   : > { %2384 = vmatprep.subr.mxu0 %v957_v56 }
  0x5e   : > { %2367 = vmatmul.mubr.msk.f32.vlgmr.msra.gmra.mrb[2].mxu0 %vm309_vm0, %v493_v11 }
  0x5f   : > { %2385 = vmatpush3.msra.mxu0 %v957_v56 }
  0x60   : > { %2389 = vmatprep.subr.mxu0 %v956_v57 }
 0x126   : > { %v2338_v15 = vpop.f32.mrb[0].mxu1 }
 0x127   : > { %v402_v16 = vpop.f32.mrb[1].mxu1 }
 0x12d   : > { %v2348_v18 = vpop.f32.mrb[0].mxu0 }
 0x12e   : > { %v2434_v19 = vadd.f32 %v2348_v18, %v2338_v15  ;;  %v566_v20 = vpop.f32.mrb[1].mxu0 }
 0x12f   : > { %v2435_v21 = vadd.f32 %v566_v20, %v402_v16 }
 0x130   : > { %v584_v22 = vadd.f32 %v2434_v19, %v2222_v17 }
 0x131   : > { %v583_v23 = vadd.f32 %v2435_v21, %v2222_v17  ;;  %v2368_v33 = vpop.f32.mrb[2].mxu0 }
 0x132   : > { %v586_v24 = vmax.f32 %v584_v22, 0.0  ;;  %v934_v34 = vpop.f32.mrb[3].mxu0  ;;  %v940_v42 = vadd.f32 %v2368_v33, %v2230_v38  ;;  %v1496_v22 = vld [vmem:[#allocation4 + $0x40] sm:$0xff] }
 0x133   : > { %v585_v25 = vmax.f32 %v583_v23, 0.0  ;;  %v935_v44 = vadd.f32 %v2230_v38, %v934_v34 }
 0x134   : > { %590 = vst.msk [vmem:[#allocation3 + $0xa] sm:$0xff] %vm309_vm0, %v586_v24 }
 0x135   : > { %589 = vst.msk [vmem:[#allocation3 + $0x2] sm:$0xff] %vm309_vm0, %v585_v25  ;;  %v1501_v25 = vld [vmem:[#allocation6 + $0x38] sm:$0xff] }
 0x13b   : > { %v758_v32 = vld [vmem:[#allocation3 + $0xa] sm:$0xff] }
 0x13c   : > { %v593_v26 = vld [vmem:[#allocation3 + $0x1] sm:$0xff]  ;;  %v594_v27 = vld [vmem:[#allocation3 + $0x9] sm:$0xff] }
 0x13d   : > { %2351 = vmatprep.mubr.msk.f32.mxu1 %vm309_vm0, %v593_v26  ;;  %v591_v28 = vld [vmem:[#allocation3] sm:$0xff]  ;;  %v592_v31 = vld [vmem:[#allocation3 + $0x8] sm:$0xff]  ;;  %v1500_v26 = vld [vmem:[#allocation6 + $0x30] sm:$0xff] }
 0x13e   : > { %v757_v30 = vld [vmem:[#allocation3 + $0x2] sm:$0xff]  ;;  %2352 = vmatmul.mubr.msk.f32.vlgmr.msra.gmra.mrb[2].mxu1 %vm309_vm0, %v594_v27  ;;  %v2257_v27 = vld [vmem:[%s2810_s2 + $0x2] ss:$0 sm:$0xff] }
 0x13f   : > { %1222 = vst.msk [vmem:[#allocation3] sm:$0xf] %vm947_vm3, %v2572_v0  ;;  %2355 = vmatpush3.msra.mxu1 %v322_v13  ;;  %2356 = vmatprep.mubr.msk.f32.mxu1 %vm309_vm0, %v591_v28 }
 0x140   : > { %2359 = vmatprep.subr.mxu1 %v324_v29 }
 0x146   : > { %2357 = vmatmul.mubr.msk.f32.vlgmr.msra.gmra.mrb[2].mxu1 %vm309_vm0, %v592_v31 }
 0x147   : > { %2360 = vmatpush3.msra.mxu1 %v324_v29  ;;  %2361 = vmatprep.mubr.msk.f32.mxu1 %vm309_vm0, %v757_v30 }
 0x148   : > { %2369 = vmatprep.subr.mxu1 %v951_v35 }
 0x14e   : > { %2362 = vmatmul.mubr.msk.f32.vlgmr.msra.gmra.mrb[2].mxu1 %vm309_vm0, %v758_v32 }
 0x14f   : > { %2370 = vmatpush3.msra.mxu1 %v951_v35 }
 0x150   : > { %2374 = vmatprep.subr.mxu1 %v950_v36 }
 0x221   : > { %v2363_v39 = vpop.f32.mrb[2].mxu1 }
 0x222   : > { %v849_v40 = vadd.f32 %v2363_v39, %v2229_v37  ;;  %v831_v41 = vpop.f32.mrb[3].mxu1  ;;  %v2265_v39 = vld [vmem:[%s2813_s5 + $0x10] sm:$0xff] }
 0x223   : > { %v848_v43 = vadd.f32 %v2229_v37, %v831_v41  ;;  %v1502_v37 = vld [vmem:[#allocation6 + $0x40] sm:$0xff]  ;;  %v2264_v41 = vld [vmem:[%s2812_s4 + $0x2] ss:$0 sm:$0xff] }
 0x224   : > { %v851_v45 = vmax.f32 %v849_v40, 0.0 }
 0x225   : > { %v850_v46 = vmax.f32 %v848_v43, 0.0  ;;  %v2267_v43 = vld [vmem:[%s2814_s6 + $0x2] ss:$0 sm:$0xff] }
 0x226   : > { %v944_v47 = vadd.f32 %v940_v42, %v851_v45 }
 0x227   : > { %v943_v48 = vadd.f32 %v935_v44, %v850_v46 }
 0x228   : > { %946 = vst.msk [vmem:[#allocation2 + $0xc] sm:$0xff] %vm309_vm0, %v944_v47 }
 0x229   : > { %945 = vst.msk [vmem:[#allocation2 + $0x4] sm:$0xff] %vm309_vm0, %v943_v48 }
 0x22f   : > { %v1128_v55 = vld [vmem:[#allocation2 + $0xc] sm:$0xff] }
 0x230   : > { %v963_v49 = vld [vmem:[#allocation2 + $0x2] sm:$0xff]  ;;  %v964_v50 = vld [vmem:[#allocation2 + $0xa] sm:$0xff] }
 0x231   : > { %2371 = vmatprep.mubr.msk.f32.mxu1 %vm309_vm0, %v963_v49  ;;  %v961_v51 = vld [vmem:[#allocation2] sm:$0xff]  ;;  %v962_v54 = vld [vmem:[#allocation2 + $0x8] sm:$0xff] }
 0x232   : > { %v1127_v53 = vld [vmem:[#allocation2 + $0x4] sm:$0xff]  ;;  %2372 = vmatmul.mubr.msk.f32.vlgmr.msra.gmra.mrb[4].mxu1 %vm309_vm0, %v964_v50 }
 0x233   : > { %1492 = vst.msk [vmem:[#allocation2] sm:$0xff] %vm309_vm0, %v2572_v0  ;;  %2375 = vmatpush3.msra.mxu1 %v950_v36  ;;  %2376 = vmatprep.mubr.msk.f32.mxu1 %vm309_vm0, %v961_v51 }
 0x234   : > { %2379 = vmatprep.subr.mxu1 %v952_v52 }
 0x23a   : > { %2377 = vmatmul.mubr.msk.f32.vlgmr.msra.gmra.mrb[4].mxu1 %vm309_vm0, %v962_v54  ;;  %v1505_v21 = vld [vmem:[#allocation2] sm:$0xff] }
 0x23b   : > { %2380 = vmatpush3.msra.mxu1 %v952_v52  ;;  %2381 = vmatprep.mubr.msk.f32.mxu1 %vm309_vm0, %v1127_v53 }
 0x23c   : > { %2399 = vmatprep.subr.mxu1 %v1495_v9 }
 0x242   : > { %2382 = vmatmul.mubr.msk.f32.vlgmr.msra.gmra.mrb[4].mxu1 %vm309_vm0, %v1128_v55 }
 0x243   : > { %2400 = vmatpush3.msra.mxu1 %v1495_v9 }
 0x244   : > { %2404 = vmatprep.subr.mxu1 %v1494_v10 }
 0x315   : > { %v2383_v59 = vpop.f32.mrb[4].mxu1 }
 0x316   : > { %v1219_v60 = vadd.f32 %v2383_v59, %v2241_v58  ;;  %v1201_v61 = vpop.f32.mrb[5].mxu1 }
 0x317   : > { %v1218_v62 = vadd.f32 %v2241_v58, %v1201_v61 }
 0x318   : > { %v1221_v63 = vmax.f32 %v1219_v60, 0.0 }
 0x319   : > { %v1220_v1 = vmax.f32 %v1218_v62, 0.0 }
 0x31a   : > { %1224 = vst.msk [vmem:[#allocation3 + $0xc] sm:$0xff] %vm309_vm0, %v1221_v63 }
 0x31b   : > { %1223 = vst.msk [vmem:[#allocation3 + $0x4] sm:$0xff] %vm309_vm0, %v1220_v1 }
 0x321   : > { %v1392_v8 = vld [vmem:[#allocation3 + $0xc] sm:$0xff] }
 0x322   : > { %v1227_v2 = vld [vmem:[#allocation3 + $0x2] sm:$0xff]  ;;  %v1228_v3 = vld [vmem:[#allocation3 + $0xa] sm:$0xff] }
 0x323   : > { %2386 = vmatprep.mubr.msk.f32.mxu0 %vm309_vm0, %v1227_v2  ;;  %v1225_v4 = vld [vmem:[#allocation3] sm:$0xff]  ;;  %v1226_v7 = vld [vmem:[#allocation3 + $0x8] sm:$0xff] }
 0x324   : > { %v1391_v6 = vld [vmem:[#allocation3 + $0x4] sm:$0xff]  ;;  %2387 = vmatmul.mubr.msk.f32.vlgmr.msra.gmra.mrb[4].mxu0 %vm309_vm0, %v1228_v3 }
 0x325   : > { %1766 = vst.msk [vmem:[#allocation3] sm:$0xff] %vm309_vm0, %v2572_v0  ;;  %2390 = vmatpush3.msra.mxu0 %v956_v57  ;;  %2391 = vmatprep.mubr.msk.f32.mxu0 %vm309_vm0, %v1225_v4  ;;  %v2248_v0 = vld [vmem:[%s2812_s4 + $0x1] ss:$0 sm:$0xff] }
 0x326   : > { %2394 = vmatprep.subr.mxu0 %v958_v5 }
 0x32c   : > { %2392 = vmatmul.mubr.msk.f32.vlgmr.msra.gmra.mrb[4].mxu0 %vm309_vm0, %v1226_v7  ;;  %v1769_v36 = vld [vmem:[#allocation3] sm:$0xff] }
 0x32d   : > { %2395 = vmatpush3.msra.mxu0 %v958_v5  ;;  %2396 = vmatprep.mubr.msk.f32.mxu0 %vm309_vm0, %v1391_v6 }
 0x32e   : > { %2414 = vmatprep.subr.mxu0 %v1501_v25 }
 0x334   : > { %2397 = vmatmul.mubr.msk.f32.vlgmr.msra.gmra.mrb[4].mxu0 %vm309_vm0, %v1392_v8 }
 0x335   : > { %2415 = vmatpush3.msra.mxu0 %v1501_v25 }
 0x336   : > { %2419 = vmatprep.subr.mxu0 %v1500_v26 }
 0x407   : > { %v2398_v11 = vpop.f32.mrb[4].mxu0 }
 0x408   : > { %v1483_v12 = vadd.f32 %v2398_v11, %v2248_v0  ;;  %v1465_v13 = vpop.f32.mrb[5].mxu0 }
 0x409   : > { %v1482_v14 = vadd.f32 %v2248_v0, %v1465_v13 }
 0x40a   : > { %v1485_v15 = vmax.f32 %v1483_v12, 0.0 }
 0x40b   : > { %v1484_v16 = vmax.f32 %v1482_v14, 0.0 }
 0x40c   : > { %v1489_v17 = vadd.f32 %v1485_v15, %v1128_v55 }
 0x40d   : > { %v1488_v18 = vadd.f32 %v1484_v16, %v1127_v53 }
 0x40e   : > { %1491 = vst.msk [vmem:[#allocation2 + $0x10] sm:$0xff] %vm309_vm0, %v1489_v17 }
 0x40f   : > { %1490 = vst.msk [vmem:[#allocation2 + $0x8] sm:$0xff] %vm309_vm0, %v1488_v18 }
 0x415   : > { %v1672_v24 = vld [vmem:[#allocation2 + $0x10] sm:$0xff] }
 0x416   : > { %v1507_v19 = vld [vmem:[#allocation2 + $0x4] sm:$0xff]  ;;  %v1508_v20 = vld [vmem:[#allocation2 + $0xc] sm:$0xff] }
 0x417   : > { %2401 = vmatprep.mubr.msk.f32.mxu1 %vm309_vm0, %v1507_v19  ;;  %v1506_v23 = vld [vmem:[#allocation2 + $0x8] sm:$0xff] }
 0x418   : > { %2402 = vmatmul.mubr.msk.f32.vlgmr.msra.gmra.mrb[6].mxu1 %vm309_vm0, %v1508_v20 }
 0x419   : > { %2405 = vmatpush3.msra.mxu1 %v1494_v10  ;;  %2406 = vmatprep.mubr.msk.f32.mxu1 %vm309_vm0, %v1505_v21 }
 0x41a   : > { %2409 = vmatprep.subr.mxu1 %v1496_v22 }
 0x420   : > { %2407 = vmatmul.mubr.msk.f32.vlgmr.msra.gmra.mrb[6].mxu1 %vm309_vm0, %v1506_v23 }
 0x421   : > { %2410 = vmatpush3.msra.mxu1 %v1496_v22  ;;  %2411 = vmatprep.mubr.msk.f32.mxu1 %vm309_vm0, %v1506_v23 }
 0x428   : > { %2412 = vmatmul.mubr.msk.f32.vlgmr.msra.gmra.mrb[6].mxu1 %vm309_vm0, %v1672_v24 }
 0x4fb   : > { %v2413_v28 = vpop.f32.mrb[6].mxu1 }
 0x4fc   : > { %v1763_v29 = vadd.f32 %v2413_v28, %v2257_v27  ;;  %v1745_v30 = vpop.f32.mrb[7].mxu1 }
 0x4fd   : > { %v1762_v31 = vadd.f32 %v2257_v27, %v1745_v30 }
 0x4fe   : > { %v1765_v32 = vmax.f32 %v1763_v29, 0.0 }
 0x4ff   : > { %v1764_v33 = vmax.f32 %v1762_v31, 0.0 }
 0x500   : > { %1768 = vst.msk [vmem:[#allocation3 + $0x10] sm:$0xff] %vm309_vm0, %v1765_v32 }
 0x501   : > { %1767 = vst.msk [vmem:[#allocation3 + $0x8] sm:$0xff] %vm309_vm0, %v1764_v33 }
 0x507   : > { %v1936_v40 = vld [vmem:[#allocation3 + $0x10] sm:$0xff] }
 0x508   : > { %v1771_v34 = vld [vmem:[#allocation3 + $0x4] sm:$0xff]  ;;  %v1772_v35 = vld [vmem:[#allocation3 + $0xc] sm:$0xff] }
 0x509   : > { %2416 = vmatprep.mubr.msk.f32.mxu0 %vm309_vm0, %v1771_v34  ;;  %v1770_v38 = vld [vmem:[#allocation3 + $0x8] sm:$0xff] }
 0x50a   : > { %2417 = vmatmul.mubr.msk.f32.vlgmr.msra.gmra.mrb[6].mxu0 %vm309_vm0, %v1772_v35 }
 0x50b   : > { %2420 = vmatpush3.msra.mxu0 %v1500_v26  ;;  %2421 = vmatprep.mubr.msk.f32.mxu0 %vm309_vm0, %v1769_v36 }
 0x50c   : > { %2424 = vmatprep.subr.mxu0 %v1502_v37 }
 0x512   : > { %2422 = vmatmul.mubr.msk.f32.vlgmr.msra.gmra.mrb[6].mxu0 %vm309_vm0, %v1770_v38 }
 0x513   : > { %2425 = vmatpush3.msra.mxu0 %v1502_v37  ;;  %2426 = vmatprep.mubr.msk.f32.mxu0 %vm309_vm0, %v1770_v38 }
 0x514   : > { %2429 = vmatprep.subr.mxu0 %v2265_v39 }
 0x51a   : > { %2427 = vmatmul.mubr.msk.f32.vlgmr.msra.gmra.mrb[6].mxu0 %vm309_vm0, %v1936_v40 }
 0x51b   : > { %2430 = vmatpush3.msra.mxu0 %v2265_v39  ;;  %2431 = vmatprep.mubr.msk.f32.mxu0 %vm309_vm0, %v1506_v23 }
 0x522   : > { %2432 = vmatmul.mubr.msk.f32.vlgmr.msra.gmra.mrb[6].mxu0 %vm309_vm0, %v1672_v24 }
 0x5f5   : > { %v2433_v42 = vpop.f32.mrb[6].mxu0 }
 0x5f6   : > { %v2436_v44 = vadd.f32 %v2433_v42, %v2264_v41  ;;  %v2112_v45 = vpop.f32.mrb[7].mxu0 }
 0x5f7   : > { %v2438_v46 = vadd.f32 %v2264_v41, %v2112_v45 }
 0x5f8   : > { %v2437_v47 = vadd.f32 %v2436_v44, %v2267_v43 }
 0x5f9   : > { %v2439_v48 = vadd.f32 %v2438_v46, %v2267_v43 }
 0x5fa   : > { %2125 = vst.msk [vmem:[%s308_s16 + $0x8] sm:$0xff] %vm2123_vm4, %v2437_v47 }
 0x5fb   : > { %2124 = vst.msk [vmem:[%s308_s16] sm:$0xff] %vm2123_vm4, %v2439_v48 }
 0x5fc PF: > { %s19_s24 = sadd.s32 1, %s2566_s24  }
 0x5fd   : > { %p16_p5 = scmp.ge.s32.totalorder %s19_s24, 4  }
 0x5ff   :  { %18 = sbr.rel (!%p16_p5) target bundleno = 2 (0x2), region = 97 }
 0x606   :  { %2147 = vsyncpa [#allocation5], 1 }
 0x607   :  { %2149 = vsyncpa [#allocation5 + $0x1], 1 }
 0x608   :  { %2150 = vsyncpa [#allocation7], 1 }

</bundles_post_ra>
